<compile_context>
chip_gen: v7x
topology: tpu7x:2x2x1
jax: 0.10.0
libtpu: 0.0.40
codegen_flags: <defaults>
</compile_context>

<pallas_src>
import functools
from types import SimpleNamespace

import jax
import jax.numpy as jnp
from jax.experimental import pallas as pl
from jax.experimental.pallas import tpu as pltpu


# ---------------------------------------------------------------------------
# helpers
# ---------------------------------------------------------------------------
def _tile_and_pad(n, cap):
    """Row tile + padded row count for a 1-D grid over `n` rows.

    If n fits in one block, use it directly (block dims == full dims is always
    legal).  Otherwise the tile is a multiple of 128 (legal on both the
    sublane and lane axes of any block it is used for); when no such divisor
    exists we pad instead of falling back to a whole-array block.
    """
    if n <= cap:
        return n, n
    cap = max(128, cap - cap % 128)
    for t in range(cap, 127, -128):
        if n % t == 0:
            return t, n
    return cap, ((n + cap - 1) // cap) * cap


def _padded_block_bytes(shape, itemsize):
    """VMEM bytes of one pipeline buffer for a 2-D block (tiled to (8, 128))."""
    r, c = shape
    return (-(-r // 8) * 8) * (-(-c // 128) * 128) * itemsize


def _vmem_limit(buffer_bytes):
    """Per-kernel scoped-VMEM limit from the actual pipeline buffers + headroom,
    kept well under v7x's 64 MiB physical VMEM."""
    return int(min(max(buffer_bytes + (4 << 20), 8 << 20), 40 << 20))


# ---------------------------------------------------------------------------
# Kernel 1: fused segment statistics.
#   stats[s, :] = sum_{n : seg_id[n] == s} rhs[n, :]
# with rhs = [H | H^2 | S^2 | 1]; a single dot over the on-chip one-hot.
# ---------------------------------------------------------------------------
def _segment_kernel(sid_ref, rhs_ref, stats_ref):
    @pl.when(pl.program_id(0) == 0)
    def _():
        stats_ref[...] = jnp.zeros_like(stats_ref)

    sid = sid_ref[...]                                   # [1, t] int32
    rhs = rhs_ref[...].astype(jnp.float32)               # [t, R]
    t = rhs.shape[0]
    num_seg = stats_ref.shape[0]                         # G*K
    # transposed one-hot membership (lane axis = nodes, dense; no lane-padded
    # index stream, no gid stream needed at all)
    member_t = (jax.lax.broadcasted_iota(jnp.int32, (num_seg, t), 0) == sid
                ).astype(jnp.float32)                    # [G*K, t]
    stats_ref[...] += jax.lax.dot_general(
        member_t, rhs, (((1,), (0,)), ((), ())),
        preferred_element_type=jnp.float32)


def segment_stats(seg_id, rhs, num_segments, *, tile_cap=1024):
    n, r = rhs.shape
    # keep the double-buffered rhs block around <= 4 MiB even for huge feature dims
    r_pad = -(-r // 128) * 128
    tile_cap = min(tile_cap, max(128, ((2 << 20) // (4 * r_pad)) // 128 * 128))
    tile, npad = _tile_and_pad(n, tile_cap)

    seg_id = seg_id.astype(jnp.int32)
    rhs = rhs.astype(jnp.float32)
    if npad != n:
        pad = npad - n
        # out-of-range segment id -> all-zero one-hot column (contributes nothing)
        seg_id = jnp.concatenate(
            [seg_id, jnp.full((pad,), num_segments, jnp.int32)])
        rhs = jnp.pad(rhs, ((0, pad), (0, 0)))
    sid_row = seg_id.reshape(1, npad)

    buf = 2 * (_padded_block_bytes((1, tile), 4) + _padded_block_bytes((tile, r), 4))
    buf += 2 * _padded_block_bytes((num_segments, r), 4)
    return pl.pallas_call(
        _segment_kernel,
        out_shape=jax.ShapeDtypeStruct((num_segments, r), jnp.float32),
        grid_spec=pltpu.PrefetchScalarGridSpec(
            num_scalar_prefetch=0,
            grid=(npad // tile,),
            in_specs=[pl.BlockSpec((1, tile), lambda i: (0, i)),
                      pl.BlockSpec((tile, r), lambda i: (i, 0))],
            out_specs=pl.BlockSpec((num_segments, r), lambda i: (0, 0))),
        compiler_params=pltpu.CompilerParams(
            dimension_semantics=("arbitrary",),
            vmem_limit_bytes=_vmem_limit(buf)),
    )(sid_row, rhs)


# ---------------------------------------------------------------------------
# Kernel 2: cluster connectivity — trace(S_n^T L S_n) and S_n^T S_n.
# 2-D tiling of L (bf16 stream, f32 accumulation); S_n passed as [K, N].
# ---------------------------------------------------------------------------
def _conn_kernel(st_i_ref, st_j_ref, l_ref, trace_ref, sts_ref,
                 *, tile, n_valid, mask_tail):
    i = pl.program_id(0)
    j = pl.program_id(1)

    @pl.when((i == 0) & (j == 0))
    def _():
        trace_ref[...] = jnp.zeros_like(trace_ref)
        sts_ref[...] = jnp.zeros_like(sts_ref)

    l = l_ref[...].astype(jnp.float32)                   # [ti, tj]
    if mask_tail:
        rows = i * tile + jax.lax.broadcasted_iota(jnp.int32, l.shape, 0)
        cols = j * tile + jax.lax.broadcasted_iota(jnp.int32, l.shape, 1)
        l = jnp.where((rows < n_valid) & (cols < n_valid), l, 0.0)

    st_i = st_i_ref[...]                                 # [K, ti]
    st_j = st_j_ref[...]                                 # [K, tj]
    # trace(S^T L S) restricted to this (i, j) tile: (S_i^T L_ij) . S_j
    a = jax.lax.dot_general(st_i, l, (((1,), (0,)), ((), ())),
                            preferred_element_type=jnp.float32)   # [K, tj]
    trace_ref[...] += jnp.sum(a * st_j)

    @pl.when(i == 0)      # S^T S accumulated once per column block
    def _():
        sts_ref[...] += jax.lax.dot_general(
            st_j, st_j, (((1,), (1,)), ((), ())),
            preferred_element_type=jnp.float32)


def connectivity_stats(s_norm, lap, *, tile_cap=1024):
    n, k = s_norm.shape
    if n <= tile_cap:
        tile, npad = n, n
    else:
        tile = max(128, tile_cap - tile_cap % 128)
        npad = ((n + tile - 1) // tile) * tile

    s_t = s_norm.astype(jnp.float32).T                   # [K, N] lane-dense
    if npad != n:
        s_t = jnp.pad(s_t, ((0, 0), (0, npad - n)))      # zero cols contribute 0
    lap_b = lap.astype(jnp.bfloat16)                     # halve the dominant HBM stream

    nblk = npad // tile
    kern = functools.partial(_conn_kernel, tile=tile, n_valid=n,
                             mask_tail=(n % tile != 0))
    buf = (2 * _padded_block_bytes((tile, tile), 2)
           + 2 * 2 * _padded_block_bytes((k, tile), 4)
           + 2 * (_padded_block_bytes((1, 1), 4) + _padded_block_bytes((k, k), 4)))
    return pl.pallas_call(
        kern,
        out_shape=(jax.ShapeDtypeStruct((1, 1), jnp.float32),
                   jax.ShapeDtypeStruct((k, k), jnp.float32)),
        grid_spec=pltpu.PrefetchScalarGridSpec(
            num_scalar_prefetch=0,
            grid=(nblk, nblk),
            in_specs=[pl.BlockSpec((k, tile), lambda i, j: (0, i)),
                      pl.BlockSpec((k, tile), lambda i, j: (0, j)),
                      pl.BlockSpec((tile, tile), lambda i, j: (i, j))],
            out_specs=(pl.BlockSpec((1, 1), lambda i, j: (0, 0)),
                       pl.BlockSpec((k, k), lambda i, j: (0, 0)))),
        compiler_params=pltpu.CompilerParams(
            dimension_semantics=("arbitrary", "arbitrary"),
            vmem_limit_bytes=_vmem_limit(buf)),
    )(s_t, s_t, lap_b)


# ---------------------------------------------------------------------------
# Kernel 3: prototype accumulation over all (graph, node) rows:
#   proto = Q_flat^T E_flat, count = colsum(Q_flat), minsim = min(1 - Q_flat)
# ---------------------------------------------------------------------------
def _proto_kernel(q_ref, e_ref, proto_ref, cnt_ref, minsim_ref):
    @pl.when(pl.program_id(0) == 0)
    def _():
        proto_ref[...] = jnp.zeros_like(proto_ref)
        cnt_ref[...] = jnp.zeros_like(cnt_ref)
        minsim_ref[...] = jnp.full_like(minsim_ref, jnp.inf)

    q = q_ref[...].astype(jnp.float32)
    e = e_ref[...].astype(jnp.float32)
    proto_ref[...] += jax.lax.dot_general(q, e, (((0,), (0,)), ((), ())),
                                          preferred_element_type=jnp.float32)
    cnt_ref[...] += jnp.sum(q, axis=0, keepdims=True)
    minsim_ref[...] = jnp.minimum(minsim_ref[...],
                                  jnp.min(1.0 - q, axis=0, keepdims=True))


def prototype_stats(q_flat, e_flat):
    rows, k = q_flat.shape
    d = e_flat.shape[-1]
    k_pad = -(-k // 128) * 128
    d_pad = -(-d // 128) * 128
    cap = 2048 if d <= 64 else 1024
    cap = min(cap, max(128, ((2 << 20) // (4 * (k_pad + d_pad))) // 128 * 128))
    tile, rpad = _tile_and_pad(rows, cap)

    q_flat = q_flat.astype(jnp.float32)
    e_flat = e_flat.astype(jnp.float32)
    if rpad != rows:
        # zero rows: proto/count += 0; 1 - 0 = 1 never lowers the min (Q in [0,1])
        q_flat = jnp.pad(q_flat, ((0, rpad - rows), (0, 0)))
        e_flat = jnp.pad(e_flat, ((0, rpad - rows), (0, 0)))

    buf = 2 * (_padded_block_bytes((tile, k), 4) + _padded_block_bytes((tile, d), 4))
    buf += 2 * (_padded_block_bytes((k, d), 4) + 2 * _padded_block_bytes((1, k), 4))
    return pl.pallas_call(
        _proto_kernel,
        out_shape=(jax.ShapeDtypeStruct((k, d), jnp.float32),
                   jax.ShapeDtypeStruct((1, k), jnp.float32),
                   jax.ShapeDtypeStruct((1, k), jnp.float32)),
        grid_spec=pltpu.PrefetchScalarGridSpec(
            num_scalar_prefetch=0,
            grid=(rpad // tile,),
            in_specs=[pl.BlockSpec((tile, k), lambda i: (i, 0)),
                      pl.BlockSpec((tile, d), lambda i: (i, 0))],
            out_specs=(pl.BlockSpec((k, d), lambda i: (0, 0)),
                       pl.BlockSpec((1, k), lambda i: (0, 0)),
                       pl.BlockSpec((1, k), lambda i: (0, 0)))),
        compiler_params=pltpu.CompilerParams(
            dimension_semantics=("arbitrary",),
            vmem_limit_bytes=_vmem_limit(buf)),
    )(q_flat, e_flat)


# ---------------------------------------------------------------------------
# tiny cross entropy (2G x C): plain jnp — a pallas_call launch would cost more
# than the math itself (review item).
# ---------------------------------------------------------------------------
def _softmax_xent(logits, labels):
    logits = logits.astype(jnp.float32)
    lse = jax.nn.logsumexp(logits, axis=-1)
    tgt = jnp.take_along_axis(logits, labels[:, None].astype(jnp.int32), axis=-1)[:, 0]
    return lse - tgt


# ---------------------------------------------------------------------------
# Step_Loss forward
# ---------------------------------------------------------------------------
def step_loss(args, output, y, lap, graph_indicator, sample_key, num_graphs):
    S = output['S'].astype(jnp.float32)      # [N, K]
    H = output['H'].astype(jnp.float32)      # [N, D]
    Q = output['Q']                          # [B, Npg, K]
    E_all = output['E_all']                  # [B, Npg, D]
    pred1 = output['pred1']                  # [G, C]
    pred2 = output['pred2']                  # [G, C]
    ind_pos = output['ind_positive_sample']  # [G] bool

    N, K = S.shape
    D = H.shape[-1]
    G = num_graphs
    length = (graph_indicator[-1] + 1).astype(jnp.float32)

    # --- loss_1 / loss_2 ---
    nll1 = _softmax_xent(pred1, y)
    nll2 = _softmax_xent(pred2, y)
    loss_1 = jnp.mean(nll1)
    mask = ind_pos.astype(jnp.float32)
    n_pos = jnp.sum(mask)
    loss_2 = args.lambda_2 * jnp.where(
        n_pos > 0, jnp.sum(mask * nll2) / jnp.maximum(n_pos, 1.0), 0.0)

    # --- (no-grad) cluster sampling for the ClusterFeature loss ---
    # TODO(synk): torch.multinomial's RNG stream cannot be reproduced;
    # jax.random.categorical is the distributional equivalent of this sampling.
    samp = jax.random.categorical(sample_key, jnp.log(S + 1e-20), axis=-1)   # [N]
    seg_id = graph_indicator.astype(jnp.int32) * K + samp.astype(jnp.int32)  # [N]

    # --- fused segment statistics: one membership matmul over [H | H^2 | S^2 | 1]
    seg_rhs = jnp.concatenate(
        [H, H * H, S * S, jnp.ones((N, 1), jnp.float32)], axis=-1)           # [N, 2D+K+1]
    stats = segment_stats(seg_id, seg_rhs, G * K)                            # [G*K, 2D+K+1]
    sum_h = stats[:, :D]                                                     # [G*K, D]
    sum_h2 = stats[:, D:2 * D]                                               # [G*K, D]
    colsq = stats[:, 2 * D:2 * D + K].reshape(G, K, K).sum(axis=1)           # [G, K]
    cnt = stats[:, 2 * D + K]                                                # [G*K]

    # --- ClusterConnectivity loss ---
    col_norm = jnp.sqrt(colsq)                                               # [G, K]
    S_norm = S / (col_norm[graph_indicator] + 1e-5)                          # [N, K]
    trace_sls, sts = connectivity_stats(S_norm, lap)
    loss_sp = trace_sls[0, 0]
    i_s = jnp.eye(K, dtype=jnp.float32) * G
    loss_ortho = jnp.sqrt(jnp.sum((sts - i_s) ** 2))
    con_loss = args.lambda_con * (loss_sp + loss_ortho) / length

    # --- ClusterFeature loss ---
    has = cnt > 0
    mean_t = jnp.where(has[:, None], sum_h / jnp.maximum(cnt, 1.0)[:, None], sum_h)
    sumsq = jnp.sum(sum_h2, axis=-1)
    feat_dist = (sumsq - 2.0 * jnp.sum(sum_h * mean_t, axis=-1)
                 + cnt * jnp.sum(mean_t * mean_t, axis=-1)) / D
    feature_loss = jnp.sum(jnp.where(has, feat_dist / jnp.maximum(cnt, 1.0), 0.0))

    means = mean_t.reshape(G, K, D)
    diff = means[:, :, None, :] - means[:, None, :, :]
    pair = jnp.mean(diff ** 2, axis=-1)                           # [G, K, K]
    triu = jnp.triu(jnp.ones((K, K), dtype=jnp.float32), k=1)
    center_i = jnp.sum(pair * triu[None], axis=(1, 2))            # [G]
    # closed form of the reference's running division
    #   cl_g = (cl_{g-1} - center_i[g]) / ((K-1)*2)
    divisor = jnp.float32((K - 1) * 2)
    weights = divisor ** (jnp.arange(G, dtype=jnp.float32) - G)   # d^(g - G)
    center_loss = -jnp.sum(center_i * weights)
    fea_loss = args.lambda_fea * (feature_loss + center_loss) / length

    # --- ClusterPrototype loss ---
    B, Npg, _ = Q.shape
    q_flat = Q.reshape(B * Npg, K)
    e_flat = E_all.reshape(B * Npg, D)
    proto, cntq, minsim = prototype_stats(q_flat, e_flat)
    loss1 = jnp.mean(minsim[0])
    count_cluster = cntq[0] + 0.1
    proto_e = proto / count_cluster[:, None]
    proto_e = proto_e / (jnp.sqrt(jnp.sum(proto_e ** 2, axis=1)) + 1e-15)[:, None]
    dd = proto_e[:, None, :] - proto_e[None, :, :]
    pm = jnp.mean(dd ** 2, axis=-1)
    center_p = -jnp.sum(pm * triu)
    center_p = center_p / (K * (K - 1) / 2)
    proto_loss = args.lambda_proto * (loss1 + center_p)

    return loss_1 + loss_2 + con_loss + fea_loss + proto_loss


if __name__ == "__main__":
    key = jax.random.PRNGKey(0)
    ks = jax.random.split(key, 9)

    G, NPG, K, D, C = 2, 32, 4, 32, 3
    N = G * NPG

    graph_indicator = jnp.repeat(jnp.arange(G, dtype=jnp.int32), NPG)
    S = jax.nn.softmax(jax.random.normal(ks[0], (N, K), jnp.float32), axis=-1)
    H = jax.random.normal(ks[1], (N, D), jnp.float32)
    Q = jax.nn.softmax(jax.random.normal(ks[2], (G, NPG, K), jnp.float32), axis=-1)
    E_all = jax.random.normal(ks[3], (G, NPG, D), jnp.float32)
    pred1 = jax.random.normal(ks[4], (G, C), jnp.float32)
    pred2 = jax.random.normal(ks[5], (G, C), jnp.float32)
    y = jax.random.randint(ks[6], (G,), 0, C)
    ind_pos = jnp.array([True, False])

    # dense symmetric-normalized Laplacian (stand-in for the sparse L_sym)
    a = jax.random.uniform(ks[7], (N, N), jnp.float32)
    adj = ((a + a.T) * 0.5 > 0.7).astype(jnp.float32)
    adj = adj * (1.0 - jnp.eye(N, dtype=jnp.float32))
    deg = jnp.sum(adj, axis=-1)
    dinv = 1.0 / jnp.sqrt(jnp.maximum(deg, 1.0))
    lap = jnp.eye(N, dtype=jnp.float32) - dinv[:, None] * adj * dinv[None, :]

    args = SimpleNamespace(lambda_2=1.0, lambda_con=0.1, lambda_fea=0.5, lambda_proto=0.2)
    output = dict(S=S, H=H, Q=Q, E_all=E_all, pred1=pred1, pred2=pred2,
                  ind_positive_sample=ind_pos)

    loss_fn = jax.jit(functools.partial(step_loss, args, num_graphs=G))
    loss = loss_fn(output, y, lap, graph_indicator, ks[8])
    loss = jax.block_until_ready(loss)
    assert jnp.isfinite(loss), "loss is not finite"
    print("KERNEL_OK")
</pallas_src>

<mosaic_0001>
module attributes {stable_mosaic.version = 11 : i64} {
  func.func @_segment_kernel(%arg0: i32, %arg1: memref<1x64xi32, #tpu.memory_space<vmem>>, %arg2: memref<64x69xf32, #tpu.memory_space<vmem>>, %arg3: memref<8x69xf32, #tpu.memory_space<vmem>>) attributes {dimension_semantics = [#tpu.dimension_semantics<arbitrary>], iteration_bounds = array<i64: 1>, scalar_prefetch = 0 : i64, scratch_operands = 0 : i64, tpu.core_type = #tpu.core_type<tc>, window_params = [{transform_indices = @transform_0, window_bounds = array<i64: 1, 64>}, {transform_indices = @transform_1, window_bounds = array<i64: 64, 69>}, {pipeline_mode = #tpu.pipeline_mode<synchronous>, transform_indices = @transform_2, window_bounds = array<i64: 8, 69>}]} {
    %c0_i32 = arith.constant 0 : i32
    %0 = arith.cmpi eq, %arg0, %c0_i32 : i32
    %1 = arith.extui %0 : i1 to i32
    %c0_i32_0 = arith.constant 0 : i32
    %2 = arith.cmpi ne, %1, %c0_i32_0 : i32
    scf.if %2 {
      %cst_8 = arith.constant 0.000000e+00 : f32
      %14 = vector.broadcast %cst_8 : f32 to vector<8x69xf32>
      %c0_9 = arith.constant 0 : index
      %c0_10 = arith.constant 0 : index
      %15 = vector.load %arg3[%c0_9, %c0_10] : memref<8x69xf32, #tpu.memory_space<vmem>>, vector<8x69xf32>
      tpu.vector_store %arg3[%c0_9, %c0_10], %14 {strides = array<i32>} : memref<8x69xf32, #tpu.memory_space<vmem>>, vector<8x69xf32>,
    } else {
    }
    %c0 = arith.constant 0 : index
    %c0_1 = arith.constant 0 : index
    %3 = vector.load %arg1[%c0, %c0_1] : memref<1x64xi32, #tpu.memory_space<vmem>>, vector<1x64xi32>
    %c0_2 = arith.constant 0 : index
    %c0_3 = arith.constant 0 : index
    %4 = vector.load %arg2[%c0_2, %c0_3] : memref<64x69xf32, #tpu.memory_space<vmem>>, vector<64x69xf32>
    %5 = tpu.iota {dimensions = array<i32: 0>} : vector<8x64xi32>
    %6 = vector.broadcast %3 : vector<1x64xi32> to vector<8x64xi32>
    %7 = arith.cmpi eq, %5, %6 : vector<8x64xi32>
    %8 = arith.extui %7 : vector<8x64xi1> to vector<8x64xi32>
    %9 = arith.sitofp %8 : vector<8x64xi32> to vector<8x64xf32>
    %c0_4 = arith.constant 0 : index
    %c0_5 = arith.constant 0 : index
    %10 = vector.load %arg3[%c0_4, %c0_5] : memref<8x69xf32, #tpu.memory_space<vmem>>, vector<8x69xf32>
    %cst = arith.constant dense<0.000000e+00> : vector<8x69xf32>
    %11 = tpu.matmul %9, %4, %cst {dimension_numbers = #tpu.dot_dimension_numbers<[1], [0], [0], [1], [0, 0, 1, 1], [], []>} : vector<8x64xf32>, vector<64x69xf32>, vector<8x69xf32> -> vector<8x69xf32>
    %12 = arith.addf %10, %11 : vector<8x69xf32>
    %c0_6 = arith.constant 0 : index
    %c0_7 = arith.constant 0 : index
    %13 = vector.load %arg3[%c0_6, %c0_7] : memref<8x69xf32, #tpu.memory_space<vmem>>, vector<8x69xf32>
    tpu.vector_store %arg3[%c0_6, %c0_7], %12 {strides = array<i32>} : memref<8x69xf32, #tpu.memory_space<vmem>>, vector<8x69xf32>,
    return
  }
  func.func @transform_0(%arg0: i32) -> (i32, i32) {
    %c0_i32 = arith.constant 0 : i32
    %c0_i32_0 = arith.constant 0 : i32
    return %c0_i32, %arg0 : i32, i32
  }
  func.func @transform_1(%arg0: i32) -> (i32, i32) {
    %c0_i32 = arith.constant 0 : i32
    %c0_i32_0 = arith.constant 0 : i32
    return %arg0, %c0_i32 : i32, i32
  }
  func.func @transform_2(%arg0: i32) -> (i32, i32) {
    %c0_i32 = arith.constant 0 : i32
    %c0_i32_0 = arith.constant 0 : i32
    %c0_i32_1 = arith.constant 0 : i32
    return %c0_i32, %c0_i32_0 : i32, i32
  }
}

module attributes {stable_mosaic.version = 11 : i64} {
  func.func @_conn_kernel(%arg0: i32, %arg1: i32, %arg2: memref<4x64xf32, #tpu.memory_space<vmem>>, %arg3: memref<4x64xf32, #tpu.memory_space<vmem>>, %arg4: memref<64x64xbf16, #tpu.memory_space<vmem>>, %arg5: memref<1x1xf32, #tpu.memory_space<vmem>>, %arg6: memref<4x4xf32, #tpu.memory_space<vmem>>) attributes {dimension_semantics = [#tpu.dimension_semantics<arbitrary>, #tpu.dimension_semantics<arbitrary>], iteration_bounds = array<i64: 1, 1>, scalar_prefetch = 0 : i64, scratch_operands = 0 : i64, tpu.core_type = #tpu.core_type<tc>, window_params = [{transform_indices = @transform_0, window_bounds = array<i64: 4, 64>}, {transform_indices = @transform_1, window_bounds = array<i64: 4, 64>}, {transform_indices = @transform_2, window_bounds = array<i64: 64, 64>}, {pipeline_mode = #tpu.pipeline_mode<synchronous>, transform_indices = @transform_3, window_bounds = array<i64: 1, 1>}, {pipeline_mode = #tpu.pipeline_mode<synchronous>, transform_indices = @transform_4, window_bounds = array<i64: 4, 4>}]} {
    %c0_i32 = arith.constant 0 : i32
    %0 = arith.cmpi eq, %arg0, %c0_i32 : i32
    %c0_i32_0 = arith.constant 0 : i32
    %1 = arith.cmpi eq, %arg1, %c0_i32_0 : i32
    %2 = arith.andi %0, %1 : i1
    %3 = arith.extui %2 : i1 to i32
    %c0_i32_1 = arith.constant 0 : i32
    %4 = arith.cmpi ne, %3, %c0_i32_1 : i32
    scf.if %4 {
      %cst_14 = arith.constant 0.000000e+00 : f32
      %22 = vector.broadcast %cst_14 : f32 to vector<1x1xf32>
      %c0_15 = arith.constant 0 : index
      %c0_16 = arith.constant 0 : index
      %23 = vector.load %arg5[%c0_15, %c0_16] : memref<1x1xf32, #tpu.memory_space<vmem>>, vector<1x1xf32>
      tpu.vector_store %arg5[%c0_15, %c0_16], %22 {strides = array<i32>} : memref<1x1xf32, #tpu.memory_space<vmem>>, vector<1x1xf32>,
      %cst_17 = arith.constant 0.000000e+00 : f32
      %24 = vector.broadcast %cst_17 : f32 to vector<4x4xf32>
      %c0_18 = arith.constant 0 : index
      %c0_19 = arith.constant 0 : index
      %25 = vector.load %arg6[%c0_18, %c0_19] : memref<4x4xf32, #tpu.memory_space<vmem>>, vector<4x4xf32>
      tpu.vector_store %arg6[%c0_18, %c0_19], %24 {strides = array<i32>} : memref<4x4xf32, #tpu.memory_space<vmem>>, vector<4x4xf32>,
    } else {
    }
    %c0 = arith.constant 0 : index
    %c0_2 = arith.constant 0 : index
    %5 = vector.load %arg4[%c0, %c0_2] : memref<64x64xbf16, #tpu.memory_space<vmem>>, vector<64x64xbf16>
    %6 = arith.extf %5 : vector<64x64xbf16> to vector<64x64xf32>
    %c0_3 = arith.constant 0 : index
    %c0_4 = arith.constant 0 : index
    %7 = vector.load %arg2[%c0_3, %c0_4] : memref<4x64xf32, #tpu.memory_space<vmem>>, vector<4x64xf32>
    %c0_5 = arith.constant 0 : index
    %c0_6 = arith.constant 0 : index
    %8 = vector.load %arg3[%c0_5, %c0_6] : memref<4x64xf32, #tpu.memory_space<vmem>>, vector<4x64xf32>
    %cst = arith.constant dense<0.000000e+00> : vector<4x64xf32>
    %9 = tpu.matmul %7, %6, %cst {dimension_numbers = #tpu.dot_dimension_numbers<[1], [0], [0], [1], [0, 0, 1, 1], [], []>} : vector<4x64xf32>, vector<64x64xf32>, vector<4x64xf32> -> vector<4x64xf32>
    %c0_7 = arith.constant 0 : index
    %c0_8 = arith.constant 0 : index
    %10 = vector.load %arg5[%c0_7, %c0_8] : memref<1x1xf32, #tpu.memory_space<vmem>>, vector<1x1xf32>
    %11 = arith.mulf %9, %8 : vector<4x64xf32>
    %12 = vector.shape_cast %11 : vector<4x64xf32> to vector<1x4x64xf32>
    %cst_9 = arith.constant dense<0.000000e+00> : vector<1xf32>
    %13 = vector.multi_reduction <add>, %12, %cst_9 [1, 2] : vector<1x4x64xf32> to vector<1xf32>
    %14 = vector.shape_cast %13 : vector<1xf32> to vector<1x1x1xf32>
    %15 = vector.extract %14[0, 0, 0] : f32 from vector<1x1x1xf32>
    %16 = vector.broadcast %15 : f32 to vector<1x1xf32>
    %17 = arith.addf %10, %16 : vector<1x1xf32>
    %c0_10 = arith.constant 0 : index
    %c0_11 = arith.constant 0 : index
    %18 = vector.load %arg5[%c0_10, %c0_11] : memref<1x1xf32, #tpu.memory_space<vmem>>, vector<1x1xf32>
    tpu.vector_store %arg5[%c0_10, %c0_11], %17 {strides = array<i32>} : memref<1x1xf32, #tpu.memory_space<vmem>>, vector<1x1xf32>,
    %c0_i32_12 = arith.constant 0 : i32
    %19 = arith.cmpi eq, %arg0, %c0_i32_12 : i32
    %20 = arith.extui %19 : i1 to i32
    %c0_i32_13 = arith.constant 0 : i32
    %21 = arith.cmpi ne, %20, %c0_i32_13 : i32
    scf.if %21 {
      %c0_14 = arith.constant 0 : index
      %c0_15 = arith.constant 0 : index
      %22 = vector.load %arg6[%c0_14, %c0_15] : memref<4x4xf32, #tpu.memory_space<vmem>>, vector<4x4xf32>
      %cst_16 = arith.constant dense<0.000000e+00> : vector<4x4xf32>
      %23 = tpu.matmul %8, %8, %cst_16 {dimension_numbers = #tpu.dot_dimension_numbers<[1], [1], [0], [0], [0, 0, 1, 0], [], []>} : vector<4x64xf32>, vector<4x64xf32>, vector<4x4xf32> -> vector<4x4xf32>
      %24 = arith.addf %22, %23 : vector<4x4xf32>
      %c0_17 = arith.constant 0 : index
      %c0_18 = arith.constant 0 : index
      %25 = vector.load %arg6[%c0_17, %c0_18] : memref<4x4xf32, #tpu.memory_space<vmem>>, vector<4x4xf32>
      tpu.vector_store %arg6[%c0_17, %c0_18], %24 {strides = array<i32>} : memref<4x4xf32, #tpu.memory_space<vmem>>, vector<4x4xf32>,
    } else {
    }
    return
  }
  func.func @transform_0(%arg0: i32, %arg1: i32) -> (i32, i32) {
    %c0_i32 = arith.constant 0 : i32
    %c0_i32_0 = arith.constant 0 : i32
    return %c0_i32, %arg0 : i32, i32
  }
  func.func @transform_1(%arg0: i32, %arg1: i32) -> (i32, i32) {
    %c0_i32 = arith.constant 0 : i32
    %c0_i32_0 = arith.constant 0 : i32
    return %c0_i32, %arg1 : i32, i32
  }
  func.func @transform_2(%arg0: i32, %arg1: i32) -> (i32, i32) {
    %c0_i32 = arith.constant 0 : i32
    return %arg0, %arg1 : i32, i32
  }
  func.func @transform_3(%arg0: i32, %arg1: i32) -> (i32, i32) {
    %c0_i32 = arith.constant 0 : i32
    %c0_i32_0 = arith.constant 0 : i32
    %c0_i32_1 = arith.constant 0 : i32
    return %c0_i32, %c0_i32_0 : i32, i32
  }
  func.func @transform_4(%arg0: i32, %arg1: i32) -> (i32, i32) {
    %c0_i32 = arith.constant 0 : i32
    %c0_i32_0 = arith.constant 0 : i32
    %c0_i32_1 = arith.constant 0 : i32
    return %c0_i32, %c0_i32_0 : i32, i32
  }
}

module attributes {stable_mosaic.version = 11 : i64} {
  func.func @_proto_kernel(%arg0: i32, %arg1: memref<64x4xf32, #tpu.memory_space<vmem>>, %arg2: memref<64x32xf32, #tpu.memory_space<vmem>>, %arg3: memref<4x32xf32, #tpu.memory_space<vmem>>, %arg4: memref<1x4xf32, #tpu.memory_space<vmem>>, %arg5: memref<1x4xf32, #tpu.memory_space<vmem>>) attributes {dimension_semantics = [#tpu.dimension_semantics<arbitrary>], iteration_bounds = array<i64: 1>, scalar_prefetch = 0 : i64, scratch_operands = 0 : i64, tpu.core_type = #tpu.core_type<tc>, window_params = [{transform_indices = @transform_0, window_bounds = array<i64: 64, 4>}, {transform_indices = @transform_1, window_bounds = array<i64: 64, 32>}, {pipeline_mode = #tpu.pipeline_mode<synchronous>, transform_indices = @transform_2, window_bounds = array<i64: 4, 32>}, {pipeline_mode = #tpu.pipeline_mode<synchronous>, transform_indices = @transform_3, window_bounds = array<i64: 1, 4>}, {pipeline_mode = #tpu.pipeline_mode<synchronous>, transform_indices = @transform_4, window_bounds = array<i64: 1, 4>}]} {
    %c0_i32 = arith.constant 0 : i32
    %0 = arith.cmpi eq, %arg0, %c0_i32 : i32
    %1 = arith.extui %0 : i1 to i32
    %c0_i32_0 = arith.constant 0 : i32
    %2 = arith.cmpi ne, %1, %c0_i32_0 : i32
    scf.if %2 {
      %cst_19 = arith.constant 0.000000e+00 : f32
      %21 = vector.broadcast %cst_19 : f32 to vector<4x32xf32>
      %c0_20 = arith.constant 0 : index
      %c0_21 = arith.constant 0 : index
      %22 = vector.load %arg3[%c0_20, %c0_21] : memref<4x32xf32, #tpu.memory_space<vmem>>, vector<4x32xf32>
      tpu.vector_store %arg3[%c0_20, %c0_21], %21 {strides = array<i32>} : memref<4x32xf32, #tpu.memory_space<vmem>>, vector<4x32xf32>,
      %cst_22 = arith.constant 0.000000e+00 : f32
      %23 = vector.broadcast %cst_22 : f32 to vector<1x4xf32>
      %c0_23 = arith.constant 0 : index
      %c0_24 = arith.constant 0 : index
      %24 = vector.load %arg4[%c0_23, %c0_24] : memref<1x4xf32, #tpu.memory_space<vmem>>, vector<1x4xf32>
      tpu.vector_store %arg4[%c0_23, %c0_24], %23 {strides = array<i32>} : memref<1x4xf32, #tpu.memory_space<vmem>>, vector<1x4xf32>,
      %cst_25 = arith.constant 0x7F800000 : f32
      %25 = vector.broadcast %cst_25 : f32 to vector<1x4xf32>
      %c0_26 = arith.constant 0 : index
      %c0_27 = arith.constant 0 : index
      %26 = vector.load %arg5[%c0_26, %c0_27] : memref<1x4xf32, #tpu.memory_space<vmem>>, vector<1x4xf32>
      tpu.vector_store %arg5[%c0_26, %c0_27], %25 {strides = array<i32>} : memref<1x4xf32, #tpu.memory_space<vmem>>, vector<1x4xf32>,
    } else {
    }
    %c0 = arith.constant 0 : index
    %c0_1 = arith.constant 0 : index
    %3 = vector.load %arg1[%c0, %c0_1] : memref<64x4xf32, #tpu.memory_space<vmem>>, vector<64x4xf32>
    %c0_2 = arith.constant 0 : index
    %c0_3 = arith.constant 0 : index
    %4 = vector.load %arg2[%c0_2, %c0_3] : memref<64x32xf32, #tpu.memory_space<vmem>>, vector<64x32xf32>
    %c0_4 = arith.constant 0 : index
    %c0_5 = arith.constant 0 : index
    %5 = vector.load %arg3[%c0_4, %c0_5] : memref<4x32xf32, #tpu.memory_space<vmem>>, vector<4x32xf32>
    %cst = arith.constant dense<0.000000e+00> : vector<4x32xf32>
    %6 = tpu.matmul %3, %4, %cst {dimension_numbers = #tpu.dot_dimension_numbers<[0], [0], [1], [1], [0, 1, 1, 1], [], []>} : vector<64x4xf32>, vector<64x32xf32>, vector<4x32xf32> -> vector<4x32xf32>
    %7 = arith.addf %5, %6 : vector<4x32xf32>
    %c0_6 = arith.constant 0 : index
    %c0_7 = arith.constant 0 : index
    %8 = vector.load %arg3[%c0_6, %c0_7] : memref<4x32xf32, #tpu.memory_space<vmem>>, vector<4x32xf32>
    tpu.vector_store %arg3[%c0_6, %c0_7], %7 {strides = array<i32>} : memref<4x32xf32, #tpu.memory_space<vmem>>, vector<4x32xf32>,
    %c0_8 = arith.constant 0 : index
    %c0_9 = arith.constant 0 : index
    %9 = vector.load %arg4[%c0_8, %c0_9] : memref<1x4xf32, #tpu.memory_space<vmem>>, vector<1x4xf32>
    %cst_10 = arith.constant dense<0.000000e+00> : vector<4xf32>
    %10 = vector.multi_reduction <add>, %3, %cst_10 [0] : vector<64x4xf32> to vector<4xf32>
    %11 = vector.shape_cast %10 : vector<4xf32> to vector<1x4xf32>
    %12 = arith.addf %9, %11 : vector<1x4xf32>
    %c0_11 = arith.constant 0 : index
    %c0_12 = arith.constant 0 : index
    %13 = vector.load %arg4[%c0_11, %c0_12] : memref<1x4xf32, #tpu.memory_space<vmem>>, vector<1x4xf32>
    tpu.vector_store %arg4[%c0_11, %c0_12], %12 {strides = array<i32>} : memref<1x4xf32, #tpu.memory_space<vmem>>, vector<1x4xf32>,
    %c0_13 = arith.constant 0 : index
    %c0_14 = arith.constant 0 : index
    %14 = vector.load %arg5[%c0_13, %c0_14] : memref<1x4xf32, #tpu.memory_space<vmem>>, vector<1x4xf32>
    %cst_15 = arith.constant 1.000000e+00 : f32
    %15 = vector.broadcast %cst_15 : f32 to vector<64x4xf32>
    %16 = arith.subf %15, %3 : vector<64x4xf32>
    %cst_16 = arith.constant dense<0x7F800000> : vector<4xf32>
    %17 = vector.multi_reduction <minimumf>, %16, %cst_16 [0] : vector<64x4xf32> to vector<4xf32>
    %18 = vector.shape_cast %17 : vector<4xf32> to vector<1x4xf32>
    %19 = arith.minimumf %14, %18 : vector<1x4xf32>
    %c0_17 = arith.constant 0 : index
    %c0_18 = arith.constant 0 : index
    %20 = vector.load %arg5[%c0_17, %c0_18] : memref<1x4xf32, #tpu.memory_space<vmem>>, vector<1x4xf32>
    tpu.vector_store %arg5[%c0_17, %c0_18], %19 {strides = array<i32>} : memref<1x4xf32, #tpu.memory_space<vmem>>, vector<1x4xf32>,
    return
  }
  func.func @transform_0(%arg0: i32) -> (i32, i32) {
    %c0_i32 = arith.constant 0 : i32
    %c0_i32_0 = arith.constant 0 : i32
    return %arg0, %c0_i32 : i32, i32
  }
  func.func @transform_1(%arg0: i32) -> (i32, i32) {
    %c0_i32 = arith.constant 0 : i32
    %c0_i32_0 = arith.constant 0 : i32
    return %arg0, %c0_i32 : i32, i32
  }
  func.func @transform_2(%arg0: i32) -> (i32, i32) {
    %c0_i32 = arith.constant 0 : i32
    %c0_i32_0 = arith.constant 0 : i32
    %c0_i32_1 = arith.constant 0 : i32
    return %c0_i32, %c0_i32_0 : i32, i32
  }
  func.func @transform_3(%arg0: i32) -> (i32, i32) {
    %c0_i32 = arith.constant 0 : i32
    %c0_i32_0 = arith.constant 0 : i32
    %c0_i32_1 = arith.constant 0 : i32
    return %c0_i32, %c0_i32_0 : i32, i32
  }
  func.func @transform_4(%arg0: i32) -> (i32, i32) {
    %c0_i32 = arith.constant 0 : i32
    %c0_i32_0 = arith.constant 0 : i32
    %c0_i32_1 = arith.constant 0 : i32
    return %c0_i32, %c0_i32_0 : i32, i32
  }
}

</mosaic_0001>

<bundles_post_ra>
// kernel: mul.30
= control target key start
LH: loop header
LB: loop body
LE: loop exit
PB: predicated region body
PF: predicated region fallthrough
CT: control target
= control target key end

     0   :  { %s100_s0 = inlined_call_operand.vmem [shape: f32[64,32], index: 0, kind: input, shape index: {}, may-alias: {0,1}]   ;;  %s101_s1 = inlined_call_operand.vmem [shape: f32[64,32], index: 1, kind: input, shape index: {}, may-alias: {0,1}]   ;;  %s102_s2 = inlined_call_operand.vmem [shape: f32[64,32], index: 2, kind: output, shape index: {}]  }
   0x1   :  { %v3_v0 = vld [vmem:[%s100_s0] sm:$0xff]  ;;  %v40_v2 = vld [vmem:[%s100_s0 + $0x8] sm:$0xff]  ;;  %v43_v5 = vld [vmem:[%s100_s0 + $0x10] sm:$0xff] }
   0x2   :  { %v4_v1 = vld [vmem:[%s101_s1] sm:$0xff]  ;;  %v41_v4 = vld [vmem:[%s101_s1 + $0x8] sm:$0xff]  ;;  %v44_v6 = vld [vmem:[%s101_s1 + $0x10] sm:$0xff] }
   0x3   :  { %v7_v3 = vmul.f32 %v4_v1, %v3_v0  ;;  %v16_v7 = vmul.f32 %v41_v4, %v40_v2  ;;  %v26_v8 = vmul.f32 %v44_v6, %v43_v5  ;;  %v46_v9 = vld [vmem:[%s100_s0 + $0x18] sm:$0xff] }
   0x4   :  { %v47_v10 = vld [vmem:[%s101_s1 + $0x18] sm:$0xff] }
   0x5   :  { %9 = vst [vmem:[%s102_s2] sm:$0xff] %v7_v3  ;;  %v36_v11 = vmul.f32 %v47_v10, %v46_v9  ;;  %42 = vst [vmem:[%s102_s2 + $0x8] sm:$0xff] %v16_v7 }
   0x6   :  { %45 = vst [vmem:[%s102_s2 + $0x10] sm:$0xff] %v26_v8 }
   0x7   :  { %48 = vst [vmem:[%s102_s2 + $0x18] sm:$0xff] %v36_v11 }

// kernel: mul.31
= control target key start
LH: loop header
LB: loop body
LE: loop exit
PB: predicated region body
PF: predicated region fallthrough
CT: control target
= control target key end

     0   :  { %s34_s0 = inlined_call_operand.vmem [shape: f32[64,4], index: 0, kind: input, shape index: {}, may-alias: {0,1}]   ;;  %s35_s1 = inlined_call_operand.vmem [shape: f32[64,4], index: 1, kind: input, shape index: {}, may-alias: {0,1}]   ;;  %s36_s2 = inlined_call_operand.vmem [shape: f32[64,4], index: 2, kind: output, shape index: {}]  }
   0x1   :  { %v3_v0 = vld [vmem:[%s34_s0] sm:$0xf] }
   0x2   :  { %v4_v1 = vld [vmem:[%s35_s1] sm:$0xf] }
   0x3   :  { %v7_v2 = vmul.f32 %v4_v1, %v3_v0 }
   0x5   :  { %9 = vst [vmem:[%s36_s2] sm:$0xf] %v7_v2 }

// kernel: step_loss.3
= control target key start
LH: loop header
LB: loop body
LE: loop exit
PB: predicated region body
PF: predicated region fallthrough
CT: control target
= control target key end

     0   :  { %v163_v0 = vmov 0.0|0.0   ;;  %vm164_vm0 = vmmov 0   ;;  %v165_v4 = vmov 0.0   ;;  %vm15_vm1 = vcmask 564224   ;;  %s219_s1 = inlined_call_operand.vmem [shape: f32[64,69], index: 1, kind: input, shape index: {}]   ;;  %s220_s2 = inlined_call_operand.vmem [shape: f32[8,69], index: 2, kind: output, shape index: {}]   ;;  %s221_s0 = inlined_call_operand.vmem [shape: s32[1,64], index: 0, kind: input, shape index: {}]  }
   0x1   :  { %148 = vmatprep.subr.bf16.mxu0 %v163_v0  ;;  %v18_v1 = vld [vmem:[%s219_s1] sm:$0xff]  ;;  %v19_v2 = vld [vmem:[%s219_s1 + $0x8] sm:$0xff]  ;;  %v20_v3 = vld [vmem:[%s219_s1 + $0x10] sm:$0xff]  ;;  %145 = vmatprep.mubr.msk.f32.mxu0 %vm164_vm0, %v165_v4  ;;  %16 = vst.msk [vmem:[%s220_s2] sm:$0xff] %vm15_vm1, %v165_v4  ;;  %v26_v10 = vlaneseq  ;;  %vm36_vm3 = vcmask 523264  }
   0x2   :  { %v149_v5 = vpack.c.bf16 %v19_v2, %v18_v1  ;;  %v21_v6 = vld [vmem:[%s219_s1 + $0x18] sm:$0xff]  ;;  %v22_v8 = vld [vmem:[%s219_s1 + $0x20] sm:$0xff]  ;;  %v23_v9 = vld [vmem:[%s219_s1 + $0x28] sm:$0xff] }
   0x3   :  { %v152_v7 = vpack.c.bf16 %v21_v6, %v20_v3  ;;  %v155_v11 = vpack.c.bf16 %v23_v9, %v22_v8  ;;  %v24_v12 = vld [vmem:[%s219_s1 + $0x30] sm:$0xff]  ;;  %v25_v13 = vld [vmem:[%s219_s1 + $0x38] sm:$0xff]  ;;  %v27_v14 = vshrl.u32 %v26_v10, 7  ;;  %v117_v15 = vld [vmem:[%s221_s0] ss:$0 sm:$0xff] }
   0x4   :  { %150 = vmatpush3.bf16.msra.mxu0 %v149_v5  ;;  %v158_v16 = vpack.c.bf16 %v25_v13, %v24_v12 }
   0x5   :  { %151 = vmatprep.subr.bf16.mxu0 %v163_v0  ;;  %vm32_vm2 = vcmp.eq.s32.totalorder %v27_v14, %v117_v15 }
   0x6   :  { %v118_v17 = vsel %vm32_vm2, 1.0, %v165_v4 }
   0x8   :  { %153 = vmatpush3.bf16.msra.mxu0 %v152_v7  ;;  %v35_v18 = vld [vmem:[%s220_s2] sm:$0xff] }
   0x9   :  { %154 = vmatprep.subr.bf16.mxu0 %v163_v0 }
   0xc   :  { %156 = vmatpush3.bf16.msra.mxu0 %v155_v11 }
   0xd   :  { %157 = vmatprep.subr.bf16.mxu0 %v163_v0 }
  0x10   :  { %159 = vmatpush3.bf16.msra.mxu0 %v158_v16 }
  0x13   :  { %146 = vmatmul.mubr.msk.f32.vlgmr.msra.gmra.mrb[0].mxu0 %vm36_vm3, %v118_v17 }
  0xe6   :  { %v106_v19 = vpop.f32.mrb[0].mxu0 }
  0xe7   :  { %v110_v20 = vadd.f32 %v106_v19, %v35_v18  ;;  %v147_v21 = vpop.f32.mrb[1].mxu0 }
  0xe9   :  { %112 = vst.msk [vmem:[%s220_s2] sm:$0xff] %vm15_vm1, %v110_v20 }

// kernel: step_loss.5
= control target key start
LH: loop header
LB: loop body
LE: loop exit
PB: predicated region body
PF: predicated region fallthrough
CT: control target
= control target key end

     0   :  { %vm150_vm0 = vcmask 31744   ;;  %vm20_vm1 = vcmask 24576   ;;  %v264_v2 = vmov 0.0|0.0   ;;  %v265_v3 = vmov 0.0   ;;  %s402_s0 = inlined_call_operand.vmem [shape: f32[64,4], index: 0, kind: input, shape index: {}]   ;;  %s403_s3 = inlined_call_operand.vmem [shape: f32[1,4], index: 3, kind: output, shape index: {1}]   ;;  %s404_s4 = inlined_call_operand.vmem [shape: f32[1,4], index: 4, kind: output, shape index: {2}]   ;;  %s405_s1 = inlined_call_operand.vmem [shape: f32[64,32], index: 1, kind: input, shape index: {}]   ;;  %s406_s2 = inlined_call_operand.vmem [shape: f32[4,32], index: 2, kind: output, shape index: {0}]  }
   0x1   :  { %v23_v0 = vld [vmem:[%s402_s0] sm:$0xff]  ;;  %v24_v1 = vld [vmem:[%s402_s0 + $0x8] sm:$0xff]  ;;  %248 = vmatprep.subr.bf16.mxu0 %v264_v2  ;;  %21 = vst.msk [vmem:[%s403_s3] sm:$0x1] %vm20_vm1, %v265_v3  ;;  %v25_v8 = vld [vmem:[%s402_s0 + $0x10] sm:$0xff]  ;;  %v266_v9 = vmov inf  }
   0x2   :  { %40 = vxpose.xlu0.b32.start [1/8] (short) (narrow) %v23_v0, 8  ;;  %v151_v4 = vsel %vm150_vm0, %v23_v0, 0.0  ;;  %v176_v5 = vsub.f32 1.0, %v23_v0  ;;  %v152_v6 = vsel %vm150_vm0, %v24_v1, 0.0  ;;  %v177_v7 = vsub.f32 1.0, %v24_v1  ;;  %v26_v13 = vld [vmem:[%s402_s0 + $0x18] sm:$0xff] }
   0x3   :  { %22 = vst.msk [vmem:[%s404_s4] sm:$0x1] %vm20_vm1, %v266_v9  ;;  %vm267_vm2 = vmmov 0   ;;  %v153_v10 = vadd.f32 %v152_v6, %v151_v4  ;;  %v154_v11 = vsel %vm150_vm0, %v25_v8, 0.0  ;;  %v178_v12 = vsub.f32 1.0, %v25_v8  ;;  %v27_v17 = vld [vmem:[%s402_s0 + $0x20] sm:$0xff] }
   0x4   :  { %245 = vmatprep.mubr.msk.f32.mxu0 %vm267_vm2, %v265_v3  ;;  %v184_v14 = vsel %vm150_vm0, %v176_v5, inf  ;;  %v156_v15 = vsel %vm150_vm0, %v26_v13, 0.0  ;;  %v179_v16 = vsub.f32 1.0, %v26_v13  ;;  %v28_v18 = vld [vmem:[%s402_s0 + $0x28] sm:$0xff]  ;;  %v185_v19 = vsel %vm150_vm0, %v177_v7, inf  ;;  %v332_v23 = vld [vmem:[%s402_s0 + $0x30] sm:$0xff] }
   0x5   :  { %v155_v20 = vadd.f32 %v154_v11, %v153_v10  ;;  %v158_v21 = vsel %vm150_vm0, %v27_v17, 0.0  ;;  %v180_v22 = vsub.f32 1.0, %v27_v17  ;;  %v31_v24 = vld [vmem:[%s405_s1] sm:$0xff]  ;;  %v32_v25 = vld [vmem:[%s405_s1 + $0x8] sm:$0xff]  ;;  %v186_v26 = vsel %vm150_vm0, %v178_v12, inf  ;;  %v30_v30 = vld [vmem:[%s402_s0 + $0x38] sm:$0xff] }
   0x6   :  { %41 = vxpose.xlu0.b32.cont [2/8] (short) (narrow) %v24_v1, 8  ;;  %v160_v27 = vsel %vm150_vm0, %v28_v18, 0.0  ;;  %v181_v28 = vsub.f32 1.0, %v28_v18  ;;  %v182_v29 = vsub.f32 1.0, %v332_v23  ;;  %v187_v31 = vsel %vm150_vm0, %v179_v16, inf  ;;  %v33_v35 = vld [vmem:[%s405_s1 + $0x10] sm:$0xff] }
   0x7   :  { %v157_v32 = vadd.f32 %v156_v15, %v155_v20  ;;  %v188_v33 = vsel %vm150_vm0, %v180_v22, inf  ;;  %v183_v34 = vsub.f32 1.0, %v30_v30  ;;  %v34_v36 = vld [vmem:[%s405_s1 + $0x18] sm:$0xff]  ;;  %v249_v40 = vpack.c.bf16 %v32_v25, %v31_v24  ;;  %v35_v50 = vld [vmem:[%s405_s1 + $0x20] sm:$0xff]  ;;  %v36_v51 = vld [vmem:[%s405_s1 + $0x28] sm:$0xff] }
   0x8   :  { %v189_v37 = vmin.f32 %v184_v14, %v188_v33  ;;  %v190_v38 = vsel %vm150_vm0, %v181_v28, inf  ;;  %v192_v39 = vsel %vm150_vm0, %v182_v29, inf  ;;  %v162_v45 = vsel %vm150_vm0, %v332_v23, 0.0  ;;  %v37_v58 = vld [vmem:[%s405_s1 + $0x30] sm:$0xff]  ;;  %v38_v59 = vld [vmem:[%s405_s1 + $0x38] sm:$0xff] }
   0x9   :  { %v159_v41 = vadd.f32 %v158_v21, %v157_v32  ;;  %v191_v42 = vmin.f32 %v185_v19, %v190_v38  ;;  %v193_v43 = vmin.f32 %v186_v26, %v192_v39  ;;  %v194_v44 = vsel %vm150_vm0, %v183_v34, inf  ;;  %250 = vmatpush3.bf16.msra.mxu0 %v249_v40  ;;  %v149_v10 = vld [vmem:[%s403_s3] sm:$0x1] }
   0xa   :  { %42 = vxpose.xlu0.b32.cont [3/8] (short) (narrow) %v25_v8, 8  ;;  %v195_v46 = vmin.f32 %v187_v31, %v194_v44  ;;  %v252_v47 = vpack.c.bf16 %v34_v36, %v33_v35  ;;  %251 = vmatprep.subr.bf16.mxu0 %v264_v2  ;;  %vm18_vm3 = vcmask 257024   ;;  %v164_v52 = vsel %vm150_vm0, %v30_v30, 0.0  ;;  %v175_v8 = vld [vmem:[%s404_s4] sm:$0x1] }
   0xb   :  { %v161_v48 = vadd.f32 %v160_v27, %v159_v41  ;;  %v196_v49 = vmin.f32 %v189_v37, %v191_v42  ;;  %19 = vst.msk [vmem:[%s406_s2] sm:$0xf] %vm18_vm3, %v265_v3  ;;  %v255_v56 = vpack.c.bf16 %v36_v51, %v35_v50  ;;  %v258_v63 = vpack.c.bf16 %v38_v59, %v37_v58 }
   0xc   :  { %v197_v53 = vmin.f32 %v193_v43, %v195_v46  ;;  %vm72_vm4 = vcmask 523264  }
   0xd   :  { %v163_v54 = vadd.f32 %v162_v45, %v161_v48  ;;  %253 = vmatpush3.bf16.msra.mxu0 %v252_v47 }
   0xe   :  { %43 = vxpose.xlu0.b32.cont [4/8] (short) (narrow) %v26_v13, 8  ;;  %v198_v55 = vmin.f32 %v196_v49, %v197_v53  ;;  %254 = vmatprep.subr.bf16.mxu0 %v264_v2 }
   0xf   :  { %v165_v57 = vadd.f32 %v164_v52, %v163_v54 }
  0x10   :  { %v199_v60 = vrot.slane %v198_v55, 4 }
  0x11   :  { %v166_v61 = vrot.slane %v165_v57, 4  ;;  %256 = vmatpush3.bf16.msra.mxu0 %v255_v56 }
  0x12   :  { %44 = vxpose.xlu0.b32.cont [5/8] (short) (narrow) %v27_v17, 8  ;;  %v200_v62 = vmin.f32 %v198_v55, %v199_v60  ;;  %257 = vmatprep.subr.bf16.mxu0 %v264_v2  ;;  %v39_v14 = vld [vmem:[%s406_s2] sm:$0xf] }
  0x13   :  { %v167_v0 = vadd.f32 %v166_v61, %v165_v57 }
  0x14   :  { %v201_v1 = vrot.slane %v200_v62, 2 }
  0x15   :  { %v168_v3 = vrot.slane %v167_v0, 2  ;;  %259 = vmatpush3.bf16.msra.mxu0 %v258_v63 }
  0x16   :  { %45 = vxpose.xlu0.b32.cont [6/8] (short) (narrow) %v28_v18, 8  ;;  %v202_v4 = vmin.f32 %v200_v62, %v201_v1 }
  0x17   :  { %v169_v5 = vadd.f32 %v168_v3, %v167_v0 }
  0x18   :  { %v203_v6 = vrot.slane %v202_v4, 1 }
  0x19   :  { %v170_v7 = vrot.slane %v169_v5, 1 }
  0x1a   :  { %46 = vxpose.xlu0.b32.cont [7/8] (short) (narrow) %v332_v23, 8  ;;  %v204_v9 = vmin.f32 %v202_v4, %v203_v6 }
  0x1b   :  { %v171_v2 = vadd.f32 %v170_v7, %v169_v5 }
  0x1c   :  { %v205_v11 = vmin.f32 %v175_v8, %v204_v9 }
  0x1d   :  { %v172_v12 = vadd.f32 %v171_v2, %v149_v10 }
  0x1e   :  { %47 = vxpose.xlu0.b32.end [8/8] (short) (narrow) %v30_v30, 8  ;;  %206 = vst.msk [vmem:[%s404_s4] sm:$0x1] %vm20_vm1, %v205_v11 }
  0x1f   :  { %174 = vst.msk [vmem:[%s403_s3] sm:$0x1] %vm20_vm1, %v172_v12 }
  0x82   :  { %v56_v13 = vpop.trf.xlu0 }
  0x83   :  { %246 = vmatmul.mubr.msk.f32.vlgmr.msra.gmra.mrb[0].mxu0 %vm72_vm4, %v56_v13 }
 0x156   :  { %v142_v15 = vpop.f32.mrb[0].mxu0 }
 0x157   :  { %v146_v16 = vadd.f32 %v142_v15, %v39_v14  ;;  %v247_v17 = vpop.f32.mrb[1].mxu0 }
 0x159   :  { %148 = vst.msk [vmem:[%s406_s2] sm:$0xf] %vm18_vm3, %v146_v16 }

// kernel: step_loss.4
= control target key start
LH: loop header
LB: loop body
LE: loop exit
PB: predicated region body
PF: predicated region fallthrough
CT: control target
= control target key end

     0   :  { %v333_v1 = vmov 0.0|0.0   ;;  %vm334_vm0 = vmmov 0   ;;  %v335_v2 = vmov 0.0   ;;  %vm45_vm1 = vcmask 523264   ;;  %s406_s0 = inlined_call_operand.vmem [shape: f32[4,64], index: 0, kind: input, shape index: {}, may-alias: {0,1}]   ;;  %s407_s1 = inlined_call_operand.vmem [shape: f32[4,64], index: 1, kind: input, shape index: {}, may-alias: {0,1}]   ;;  %s408_s2 = inlined_call_operand.vmem [shape: bf16[64,64], index: 2, kind: input, shape index: {}]   ;;  %s409_s3 = inlined_call_operand.hbm [shape: f32[1,1], index: 3, kind: output, shape index: {0}]   ;;  %s410_s4 = inlined_call_operand.vmem [shape: f32[4,4], index: 4, kind: output, shape index: {1}]  }
   0x1   :  { %v238_v0 = vld [vmem:[%s408_s2] sm:$0xff]   ;;  %291 = vmatprep.subr.bf16.mxu0 %v333_v1  ;;  %283 = vmatprep.mubr.msk.f32.mxu0 %vm334_vm0, %v335_v2 }
   0x2   :  { %v44_v3 = vld [vmem:[%s407_s1] sm:$0xf]  ;;  %293 = vmatpush3.bf16.msra.mxu0 %v238_v0  ;;  %286 = vmatprep.subr.mxu1 %v335_v2 }
   0x3   :  { %10 = vsyncpa [#allocation3], 0  ;;  %294 = vmatprep.subr.bf16.mxu0 %v333_v1  ;;  %v253_v4 = vld [vmem:[%s408_s2 + $0x8] sm:$0xff]   ;;  %287 = vmatpush3.xpose.msk.msra.mxu1 %vm45_vm1, %v44_v3  ;;  %v254_v5 = vld [vmem:[%s408_s2 + $0x10] sm:$0xff]   ;;  %vm121_vm2 = vcmask 519168   ;;  %vm23_vm3 = vcmask 0  }
   0x4   :  { %288 = vmatprep.mubr.msk.f32.mxu1 %vm334_vm0, %v335_v2  ;;  %v255_v6 = vld [vmem:[%s408_s2 + $0x18] sm:$0xff]   ;;  %v43_v7 = vld [vmem:[%s406_s0] sm:$0xf]  ;;  %24 = vst.msk [vmem:[#allocation2] sm:$0x1] %vm23_vm3, %v335_v2  ;;  %vm25_vm4 = vcmask 27648  }
   0x5   :  { %26 = vst.msk [vmem:[%s410_s4] sm:$0xf] %vm25_vm4, %v335_v2  ;;  %s336_s30 = smov [#allocation2]  }
   0x6   :  { %296 = vmatpush3.bf16.msra.mxu0 %v253_v4  ;;  %289 = vmatmul.mubr.msk.f32.vlgmr.msra.gmra.mrb[0].mxu1 %vm45_vm1, %v44_v3  ;;  %s222_s5 = sshll.u32 %s336_s30, 4  ;;  %s223_s5 = int_to_ptr.vmem [resolvable:$true] %s222_s5 }
   0x7   :  { %297 = vmatprep.subr.bf16.mxu0 %v333_v1  ;;  %s309_s7 = scalar_lea.vmem %s223_s5, 16  ;;  %p314_p1 = scmp.lt.s32.totalorder %s223_s5, %s223_s5 }
   0x8   :  { %p310_p0 = scmp.ne.s32.totalorder %s223_s5, %s309_s7 }
   0xa   :  { %299 = vmatpush3.bf16.msra.mxu0 %v254_v5 }
   0xb   :  { %300 = vmatprep.subr.bf16.mxu0 %v333_v1  ;;  %v119_v23 = vld [vmem:[#allocation2] sm:$0x1] }
   0xc   :  { %v139_v13 = vld [vmem:[%s410_s4] sm:$0xf] }
   0xe   :  { %302 = vmatpush3.bf16.msra.mxu0 %v255_v6 }
  0x11   :  { %284 = vmatmul.mubr.msk.f32.vlgmr.msra.gmra.mrb[0].mxu0 %vm45_vm1, %v43_v7 }
  0xd9   :  { %v209_v12 = vpop.f32.mrb[0].mxu1 }
  0xda   :  { %v290_v14 = vpop.f32.mrb[1].mxu1  ;;  %v213_v15 = vadd.f32 %v209_v12, %v139_v13 }
  0xdc   :  { %215 = vst.msk [vmem:[%s410_s4] sm:$0xf] %vm25_vm4, %v213_v15  ;;  %s313_s4 = scalar_lea.vmem %s223_s5, 32 }
  0xdd   :  { %p315_p2 = scmp.lt.s32.totalorder %s313_s4, %s309_s7 }
  0xdf   :  { %p316_p3 = por %p315_p2, %p314_p1 }
  0xe1   :  { %p317_p4 = pnand %p316_p3, %p310_p0 }
  0xe4   :  { %v115_v8 = vpop.f32.mrb[0].mxu0 }
  0xe5   :  { %v120_v9 = vmul.f32 %v115_v8, %v44_v3  ;;  %v285_v10 = vpop.f32.mrb[1].mxu0 }
  0xe7   :  { %v122_v11 = vsel %vm121_vm2, %v120_v9, 0.0 }
  0xe8   :  { %123 = vadd.xlane.f32.xlu0 %v122_v11 }
 0x175   :  { %v124_v16 = vpop.xlane.xlu0 %123 }
 0x176   :  { %v125_v17 = vrot.slane %v124_v16, 4 }
 0x178   :  { %v126_v18 = vadd.f32 %v125_v17, %v124_v16 }
 0x17a   :  { %v127_v19 = vrot.slane %v126_v18, 2 }
 0x17c   :  { %v128_v20 = vadd.f32 %v127_v19, %v126_v18 }
 0x17e   :  { %v129_v21 = vrot.slane %v128_v20, 1 }
 0x180   :  { %v130_v22 = vadd.f32 %v129_v21, %v128_v20 }
 0x182   :  { %303 = vpush %v130_v22 }
 0x1b3   :  { %s304_s6 = spop %303 }
 0x1b4   :  { %v132_v24 = vstv %s304_s6 }
 0x1b5   :  { %v133_v25 = vadd.f32 %v132_v24, %v119_v23 }
 0x1b7   :  { %135 = vst.msk [vmem:[#allocation2] sm:$0x1] %vm23_vm3, %v133_v25 }
 0x1b8   :  { %320 = shalt.err (!%p317_p4)
}
 0x1b9   :  { %s321_s10 = scalar_lea.hbm %s409_s3, 16 }
 0x1ba   :  { %p322_p5 = scmp.ne.s32.totalorder %s409_s3, %s321_s10  ;;  %p325_p6 = scmp.lt.u32.totalorder %s321_s10, %s409_s3 }
 0x1bc   :  { %p327_p7 = pnand %p325_p6, %p322_p5 }
 0x1be   :  { %330 = shalt.err (!%p327_p7)
}
 0x1bf   :  { %225 = dma.vmem_to_hbm [thread:$0]  %s223_s5, 16, %s409_s3, [#allocation3]  }
 0x1c0   :  { %331 = dma.done.wait [#allocation3], 16  }
 0x1c1   :  { %332 = vsyncadd [#allocation3], 4294967280 }
 0x1c2   :  { %233 = vsyncpa [#allocation3], 1 }

</bundles_post_ra>
